<compile_context>
chip_gen: v5e
topology: v5e:2x2
jax: 0.10.0
libtpu: 0.0.40
codegen_flags: <defaults>
</compile_context>

<pallas_src>
import jax
import jax.numpy as jnp
from jax.experimental import pallas as pl
from jax.experimental.pallas import tpu as pltpu


def _interp_matrix(n_in: int) -> jnp.ndarray:
    """(2*n_in, n_in) 1-D linear-interpolation matrix matching
    F.interpolate(scale_factor=2, mode='trilinear', align_corners=False)."""
    n_out = 2 * n_in
    dst = jnp.arange(n_out, dtype=jnp.float32)
    src = jnp.maximum((dst + 0.5) / 2.0 - 0.5, 0.0)          # half-pixel, clamp low
    i0 = jnp.minimum(jnp.floor(src).astype(jnp.int32), n_in - 1)
    i1 = jnp.minimum(i0 + 1, n_in - 1)
    w = src - i0.astype(jnp.float32)
    rows = jnp.arange(n_out)
    a = jnp.zeros((n_out, n_in), dtype=jnp.float32)
    a = a.at[rows, i0].add(1.0 - w)
    a = a.at[rows, i1].add(w)
    return a


def _pick_tile(total: int, target: int, quantum: int) -> int:
    """Largest divisor of `total` that is <= target and a multiple of `quantum`;
    falls back to `total` (a full-dim block is always shape-legal)."""
    if total <= target:
        return total
    t = (target // quantum) * quantum
    while t >= quantum:
        if total % t == 0:
            return t
        t -= quantum
    return total


def _pick_batch_block(n: int, cid: int, lane_width: int) -> int:
    """Largest divisor NB of n whose x tile / z scratch stay <= 4 MiB (bf16) and
    whose row block NB*cid is sublane-aligned (or covers the full batch)."""
    budget = 4 << 20
    for nb in range(n, 0, -1):
        if n % nb:
            continue
        if nb != n and (nb * cid) % 8 != 0:
            continue
        if nb * cid * lane_width * 2 <= budget:
            return nb
    return n   # full-batch block is always legal; budget is best-effort


def _kernel(x_ref, ahw_t_ref, wd_ref, bias_ref, o_ref, z_ref):
    # x_ref:     (NB*CiD, HW)  bf16  batch block, rows = (n, ci, d)
    # ahw_t_ref: (HW, TL)      bf16  lane tile of kron(A_H, A_W)^T
    # wd_ref:    (TM, CiD)     bf16  row tile of kron(W_conv, A_D)
    # bias_ref:  (TM, 1)       f32
    # o_ref:     (NB, TM, TL)  input dtype
    # z_ref:     (NB*CiD, TL)  bf16 scratch: H/W-interpolated block, reused
    #                          across the innermost Co*Do grid axis.
    nb = o_ref.shape[0]
    cid = wd_ref.shape[1]

    # H/W interpolation: one batch-folded MXU matmul, recomputed only when the
    # (batch block, lane tile) changes.
    @pl.when(pl.program_id(2) == 0)
    def _():
        z = jnp.dot(x_ref[...], ahw_t_ref[...],
                    preferred_element_type=jnp.float32)       # (NB*CiD, TL)
        z_ref[...] = z.astype(z_ref.dtype)

    # D interpolation + 1x1x1 conv: per-batch-element matmul (M = CoDo tile).
    # K = CiD is small; acceptable here — see TODO on K packing for huge Ci*D.
    wd = wd_ref[...]
    bias = bias_ref[...]
    for n in range(nb):                                        # static unroll
        zb = z_ref[pl.ds(n * cid, cid), :]                     # (CiD, TL)
        out_n = jnp.dot(wd, zb, preferred_element_type=jnp.float32) + bias
        o_ref[n] = out_n.astype(o_ref.dtype)


def trilinear_interp_conv3d(x, conv_w, conv_b):
    """x: (N, Ci, D, H, W); conv_w: (Co, Ci, 1, 1, 1); conv_b: (Co,)."""
    N, Ci, D, H, W = x.shape
    Co = conv_w.shape[0]
    Do, Ho, Wo = 2 * D, 2 * H, 2 * W
    CiD, CoDo = Ci * D, Co * Do
    HW, HoWo = H * W, Ho * Wo
    out_dtype = x.dtype

    # --- fused operator matrices (parameter glue, plain JAX) ---
    a_d = _interp_matrix(D)
    a_h = _interp_matrix(H)
    a_w = _interp_matrix(W)
    # TODO(synk): for large spatial sizes (H*W >~ 1024) switch to a separable
    # W-then-H interpolation path; the dense kron scales O((H*W)^2).
    a_hw_t = jnp.kron(a_h, a_w).T.astype(jnp.bfloat16)                 # (HW, HoWo)
    w_d = jnp.kron(conv_w.reshape(Co, Ci), a_d).astype(jnp.bfloat16)   # (CoDo, CiD)
    bias_col = jnp.repeat(conv_b.astype(jnp.float32), Do).reshape(CoDo, 1)

    # Interp weights are dyadic fractions -> exact in bf16; accumulate in f32.
    x2 = x.reshape(N * CiD, HW).astype(jnp.bfloat16)          # contiguous reshape

    # --- tile selection (shape-dependent, VMEM-budgeted) ---
    lane_target = min(2048, max(128, (4 << 20) // (2 * HW)))
    TL = _pick_tile(HoWo, lane_target, 128)                   # Ho*Wo lane tile
    NB = _pick_batch_block(N, CiD, max(HW, TL))               # batch block
    tm_target = max(8, min(512, ((6 << 20) // (4 * NB * TL)) // 8 * 8))
    TM = _pick_tile(CoDo, tm_target, 8)                       # Co*Do row tile
    grid = (N // NB, HoWo // TL, CoDo // TM)

    # VMEM: double-buffered in/out tiles + scratch + matmul-intermediate headroom.
    out_bpe = jnp.dtype(out_dtype).itemsize
    tiles = (NB * CiD * HW * 2 + HW * TL * 2 + TM * CiD * 2 + TM * 4
             + NB * TM * TL * out_bpe)
    vmem_limit = int(min(max(2 * tiles + NB * CiD * TL * 6 + (4 << 20),
                             16 << 20), 48 << 20))

    out3 = pl.pallas_call(
        _kernel,
        out_shape=jax.ShapeDtypeStruct((N, CoDo, HoWo), out_dtype),
        grid=grid,
        in_specs=[
            pl.BlockSpec((NB * CiD, HW), lambda b, l, m: (b, 0)),
            pl.BlockSpec((HW, TL), lambda b, l, m: (0, l)),
            pl.BlockSpec((TM, CiD), lambda b, l, m: (m, 0)),
            pl.BlockSpec((TM, 1), lambda b, l, m: (m, 0)),
        ],
        out_specs=pl.BlockSpec((NB, TM, TL), lambda b, l, m: (b, m, l)),
        scratch_shapes=[pltpu.VMEM((NB * CiD, TL), jnp.bfloat16)],
        compiler_params=pltpu.CompilerParams(
            dimension_semantics=("parallel", "parallel", "arbitrary"),
            vmem_limit_bytes=vmem_limit),
    )(x2, a_hw_t, w_d, bias_col)

    return out3.reshape(N, Co, Do, Ho, Wo)


def _reference_forward(x, conv_w, conv_b):
    """Independent pure-JAX f32 reference (gather-based trilinear, PyTorch semantics)."""
    N, Ci, D, H, W = x.shape
    Co = conv_w.shape[0]

    def axis_params(n_in):
        dst = jnp.arange(2 * n_in, dtype=jnp.float32)
        src = jnp.maximum((dst + 0.5) / 2.0 - 0.5, 0.0)
        i0 = jnp.minimum(jnp.floor(src).astype(jnp.int32), n_in - 1)
        i1 = jnp.minimum(i0 + 1, n_in - 1)
        w = src - i0.astype(jnp.float32)
        return i0, i1, w

    d0, d1, wd = axis_params(D)
    h0, h1, wh = axis_params(H)
    w0, w1, ww = axis_params(W)

    y = (x[:, :, d0] * (1 - wd)[None, None, :, None, None]
         + x[:, :, d1] * wd[None, None, :, None, None])
    y = (y[:, :, :, h0] * (1 - wh)[None, None, None, :, None]
         + y[:, :, :, h1] * wh[None, None, None, :, None])
    y = y[:, :, :, :, w0] * (1 - ww) + y[:, :, :, :, w1] * ww
    out = jnp.einsum('oc,ncdhw->nodhw', conv_w.reshape(Co, Ci), y)
    return out + conv_b[None, :, None, None, None]


if __name__ == "__main__":
    key = jax.random.PRNGKey(0)
    N, Ci, Co = 2, 4, 8
    D = H = W = 8

    kx, kw, kb = jax.random.split(key, 3)
    x = jax.random.normal(kx, (N, Ci, D, H, W), dtype=jnp.float32)

    # Deterministic Conv3d init (PyTorch default: U(-k, k), k = 1/sqrt(Ci)).
    bound = 1.0 / (Ci ** 0.5)
    conv_w = jax.random.uniform(kw, (Co, Ci, 1, 1, 1), minval=-bound, maxval=bound,
                                dtype=jnp.float32)
    conv_b = jax.random.uniform(kb, (Co,), minval=-bound, maxval=bound,
                                dtype=jnp.float32)

    fwd = jax.jit(trilinear_interp_conv3d)
    out = jax.block_until_ready(fwd(x, conv_w, conv_b))

    ref = _reference_forward(x, conv_w, conv_b)
    assert out.shape == (N, Co, 2 * D, 2 * H, 2 * W), out.shape
    max_err = float(jnp.max(jnp.abs(out - ref)))
    # bf16 operands / f32 accumulation -> loosened tolerance vs f32 reference.
    assert jnp.allclose(out, ref, rtol=2e-2, atol=2e-2), max_err

    print("KERNEL_OK")
</pallas_src>

<mosaic_0001>
module attributes {stable_mosaic.version = 11 : i64} {
  func.func @_kernel(%arg0: i32, %arg1: i32, %arg2: i32, %arg3: memref<64x64xbf16, #tpu.memory_space<vmem>>, %arg4: memref<64x256xbf16, #tpu.memory_space<vmem>>, %arg5: memref<128x32xbf16, #tpu.memory_space<vmem>>, %arg6: memref<128x1xf32, #tpu.memory_space<vmem>>, %arg7: memref<2x128x256xf32, #tpu.memory_space<vmem>>, %arg8: memref<64x256xbf16, #tpu.memory_space<vmem>>) attributes {dimension_semantics = [#tpu.dimension_semantics<parallel>, #tpu.dimension_semantics<parallel>, #tpu.dimension_semantics<arbitrary>], iteration_bounds = array<i64: 1, 1, 1>, scalar_prefetch = 0 : i64, scratch_operands = 1 : i64, tpu.core_type = #tpu.core_type<tc>, window_params = [{transform_indices = @transform_0, window_bounds = array<i64: 64, 64>}, {transform_indices = @transform_1, window_bounds = array<i64: 64, 256>}, {transform_indices = @transform_2, window_bounds = array<i64: 128, 32>}, {transform_indices = @transform_3, window_bounds = array<i64: 128, 1>}, {transform_indices = @transform_4, window_bounds = array<i64: 2, 128, 256>}]} {
    %c0_i32 = arith.constant 0 : i32
    %0 = arith.cmpi eq, %arg2, %c0_i32 : i32
    %1 = arith.extui %0 : i1 to i32
    %c0_i32_0 = arith.constant 0 : i32
    %2 = arith.cmpi ne, %1, %c0_i32_0 : i32
    scf.if %2 {
      %c0_13 = arith.constant 0 : index
      %c0_14 = arith.constant 0 : index
      %19 = vector.load %arg3[%c0_13, %c0_14] : memref<64x64xbf16, #tpu.memory_space<vmem>>, vector<64x64xbf16>
      %c0_15 = arith.constant 0 : index
      %c0_16 = arith.constant 0 : index
      %20 = vector.load %arg4[%c0_15, %c0_16] : memref<64x256xbf16, #tpu.memory_space<vmem>>, vector<64x256xbf16>
      %cst_17 = arith.constant dense<0.000000e+00> : vector<64x256xf32>
      %21 = tpu.matmul %19, %20, %cst_17 {dimension_numbers = #tpu.dot_dimension_numbers<[1], [0], [0], [1], [0, 0, 1, 1], [], []>} : vector<64x64xbf16>, vector<64x256xbf16>, vector<64x256xf32> -> vector<64x256xf32>
      %22 = arith.truncf %21 : vector<64x256xf32> to vector<64x256xbf16>
      %c0_18 = arith.constant 0 : index
      %c0_19 = arith.constant 0 : index
      %23 = vector.load %arg8[%c0_18, %c0_19] : memref<64x256xbf16, #tpu.memory_space<vmem>>, vector<64x256xbf16>
      tpu.vector_store %arg8[%c0_18, %c0_19], %22 {strides = array<i32>} : memref<64x256xbf16, #tpu.memory_space<vmem>>, vector<64x256xbf16>,
    } else {
    }
    %c0 = arith.constant 0 : index
    %c0_1 = arith.constant 0 : index
    %3 = vector.load %arg5[%c0, %c0_1] : memref<128x32xbf16, #tpu.memory_space<vmem>>, vector<128x32xbf16>
    %c0_2 = arith.constant 0 : index
    %c0_3 = arith.constant 0 : index
    %4 = vector.load %arg6[%c0_2, %c0_3] : memref<128x1xf32, #tpu.memory_space<vmem>>, vector<128x1xf32>
    %c0_4 = arith.constant 0 : index
    %c0_5 = arith.constant 0 : index
    %5 = vector.load %arg8[%c0_4, %c0_5] : memref<64x256xbf16, #tpu.memory_space<vmem>>, vector<32x256xbf16>
    %cst = arith.constant dense<0.000000e+00> : vector<128x256xf32>
    %6 = tpu.matmul %3, %5, %cst {dimension_numbers = #tpu.dot_dimension_numbers<[1], [0], [0], [1], [0, 0, 1, 1], [], []>} : vector<128x32xbf16>, vector<32x256xbf16>, vector<128x256xf32> -> vector<128x256xf32>
    %7 = vector.broadcast %4 : vector<128x1xf32> to vector<128x256xf32>
    %8 = arith.addf %6, %7 : vector<128x256xf32>
    %c0_6 = arith.constant 0 : index
    %c0_7 = arith.constant 0 : index
    %c0_8 = arith.constant 0 : index
    %9 = vector.load %arg7[%c0_6, %c0_7, %c0_8] : memref<2x128x256xf32, #tpu.memory_space<vmem>>, vector<1x128x256xf32>
    %10 = vector.shape_cast %9 : vector<1x128x256xf32> to vector<128x256xf32>
    %11 = vector.shape_cast %8 : vector<128x256xf32> to vector<1x128x256xf32>
    tpu.vector_store %arg7[%c0_6, %c0_7, %c0_8], %11 {strides = array<i32>} : memref<2x128x256xf32, #tpu.memory_space<vmem>>, vector<1x128x256xf32>,
    %c32 = arith.constant 32 : index
    %c0_9 = arith.constant 0 : index
    %12 = vector.load %arg8[%c32, %c0_9] : memref<64x256xbf16, #tpu.memory_space<vmem>>, vector<32x256xbf16>
    %cst_10 = arith.constant dense<0.000000e+00> : vector<128x256xf32>
    %13 = tpu.matmul %3, %12, %cst_10 {dimension_numbers = #tpu.dot_dimension_numbers<[1], [0], [0], [1], [0, 0, 1, 1], [], []>} : vector<128x32xbf16>, vector<32x256xbf16>, vector<128x256xf32> -> vector<128x256xf32>
    %14 = vector.broadcast %4 : vector<128x1xf32> to vector<128x256xf32>
    %15 = arith.addf %13, %14 : vector<128x256xf32>
    %c1 = arith.constant 1 : index
    %c0_11 = arith.constant 0 : index
    %c0_12 = arith.constant 0 : index
    %16 = vector.load %arg7[%c1, %c0_11, %c0_12] : memref<2x128x256xf32, #tpu.memory_space<vmem>>, vector<1x128x256xf32>
    %17 = vector.shape_cast %16 : vector<1x128x256xf32> to vector<128x256xf32>
    %18 = vector.shape_cast %15 : vector<128x256xf32> to vector<1x128x256xf32>
    tpu.vector_store %arg7[%c1, %c0_11, %c0_12], %18 {strides = array<i32>} : memref<2x128x256xf32, #tpu.memory_space<vmem>>, vector<1x128x256xf32>,
    return
  }
  func.func @transform_0(%arg0: i32, %arg1: i32, %arg2: i32) -> (i32, i32) {
    %c0_i32 = arith.constant 0 : i32
    %c0_i32_0 = arith.constant 0 : i32
    return %arg0, %c0_i32 : i32, i32
  }
  func.func @transform_1(%arg0: i32, %arg1: i32, %arg2: i32) -> (i32, i32) {
    %c0_i32 = arith.constant 0 : i32
    %c0_i32_0 = arith.constant 0 : i32
    return %c0_i32, %arg1 : i32, i32
  }
  func.func @transform_2(%arg0: i32, %arg1: i32, %arg2: i32) -> (i32, i32) {
    %c0_i32 = arith.constant 0 : i32
    %c0_i32_0 = arith.constant 0 : i32
    return %arg2, %c0_i32 : i32, i32
  }
  func.func @transform_3(%arg0: i32, %arg1: i32, %arg2: i32) -> (i32, i32) {
    %c0_i32 = arith.constant 0 : i32
    %c0_i32_0 = arith.constant 0 : i32
    return %arg2, %c0_i32 : i32, i32
  }
  func.func @transform_4(%arg0: i32, %arg1: i32, %arg2: i32) -> (i32, i32, i32) {
    %c0_i32 = arith.constant 0 : i32
    return %arg0, %arg2, %arg1 : i32, i32, i32
  }
}

</mosaic_0001>

<bundles_post_ra>
// kernel: trilinear_interp_conv3d.1
= control target key start
LH: loop header
LB: loop body
LE: loop exit
PB: predicated region body
PF: predicated region fallthrough
CT: control target
= control target key end

     0   :  { %vm98_vm0 = vcmask 523264   ;;  %v899_v49 = vmov 0   ;;  %vm361_vm1 = vcmask 261120   ;;  %s1281_s1 = inlined_call_operand.vmem [shape: bf16[64,256], index: 1, kind: input, shape index: {}]   ;;  %s1282_s0 = inlined_call_operand.vmem [shape: bf16[64,64], index: 0, kind: input, shape index: {}]   ;;  %s1283_s3 = inlined_call_operand.vmem [shape: f32[128,1], index: 3, kind: input, shape index: {}]   ;;  %s1284_s2 = inlined_call_operand.vmem [shape: bf16[128,32], index: 2, kind: input, shape index: {}]   ;;  %s1285_s4 = inlined_call_operand.vmem [shape: f32[2,128,256], index: 4, kind: output, shape index: {}]  }
   0x1   :  { %v717_v0 = vld [vmem:[%s1281_s1 + $0x30] sm:$0xf]  ;;  %v870_v1 = vld [vmem:[%s1281_s1 + $0x34] sm:$0xf0]  ;;  %v869_v2 = vld [vmem:[%s1281_s1 + $0x34] sm:$0xf]  ;;  %896 = vset.pattern.permute.xlu0 %v899_v49  ;;  %897 = vset.pattern.permute.xlu1 %v899_v49 }
   0x2   :  { %v718_v3 = vor.u32 %v870_v1, %v717_v0  ;;  %v719_v4 = vld [vmem:[%s1281_s1 + $0x38] sm:$0xf0]  ;;  %v709_v5 = vld [vmem:[%s1281_s1 + $0x20] sm:$0xf]  ;;  %v868_v6 = vld [vmem:[%s1281_s1 + $0x24] sm:$0xf0]  ;;  %898 = vset.pattern.permute.xlu2 %v899_v49 }
   0x3   :  { %v722_v7 = vor.u32 %v869_v2, %v719_v4  ;;  %v867_v8 = vld [vmem:[%s1281_s1 + $0x24] sm:$0xf]  ;;  %v711_v9 = vld [vmem:[%s1281_s1 + $0x28] sm:$0xf0]  ;;  %v710_v10 = vor.u32 %v868_v6, %v709_v5  ;;  %v701_v12 = vld [vmem:[%s1281_s1 + $0x10] sm:$0xf] }
   0x4   :  { %115 = vmatpush.bf16.msra.mxu0 %v718_v3  ;;  %887 = vmatpush.bf16.msra.mxu2 %v718_v3  ;;  %v714_v11 = vor.u32 %v867_v8, %v711_v9  ;;  %v866_v13 = vld [vmem:[%s1281_s1 + $0x14] sm:$0xf0]  ;;  %v865_v14 = vld [vmem:[%s1281_s1 + $0x14] sm:$0xf]  ;;  %v703_v15 = vld [vmem:[%s1281_s1 + $0x18] sm:$0xf0] }
   0x5   :  { %144 = vmatpush.bf16.msra.mxu1 %v722_v7  ;;  %891 = vmatpush.bf16.msra.mxu3 %v722_v7  ;;  %v702_v16 = vor.u32 %v866_v13, %v701_v12  ;;  %v706_v17 = vor.u32 %v865_v14, %v703_v15  ;;  %v693_v18 = vld [vmem:[%s1281_s1] sm:$0xf]  ;;  %v864_v19 = vld [vmem:[%s1281_s1 + $0x4] sm:$0xf0]  ;;  %v863_v20 = vld [vmem:[%s1281_s1 + $0x4] sm:$0xf] }
   0x6   :  { %v695_v21 = vld [vmem:[%s1281_s1 + $0x8] sm:$0xf0]  ;;  %v694_v22 = vor.u32 %v864_v19, %v693_v18  ;;  %v859_v24 = vld [vmem:[%s1282_s0] sm:$0xff]  ;;  %v861_v25 = vld [vmem:[%s1282_s0 + $0x10] sm:$0xff] }
   0x7   :  { %v698_v23 = vor.u32 %v863_v20, %v695_v21  ;;  %v860_v26 = vld [vmem:[%s1282_s0 + $0x8] sm:$0xff]  ;;  %v862_v27 = vld [vmem:[%s1282_s0 + $0x18] sm:$0xff]  ;;  %v201_v50 = vld [vmem:[%s1283_s3] sm:$0xff] }
   0x8   :  { %116 = vmatpush.bf16.msra.mxu0 %v710_v10  ;;  %888 = vmatpush.bf16.msra.mxu2 %v710_v10  ;;  %v202_v62 = vld [vmem:[%s1283_s3 + $0x8] sm:$0xff]  ;;  %v871_v4 = vld [vmem:[%s1284_s2] sm:$0xff]  ;;  %v203_v14 = vld [vmem:[%s1283_s3 + $0x10] sm:$0xff] }
   0x9   :  { %145 = vmatpush.bf16.msra.mxu1 %v714_v11  ;;  %892 = vmatpush.bf16.msra.mxu3 %v714_v11  ;;  %v872_v18 = vld [vmem:[%s1284_s2 + $0x8] sm:$0xff]  ;;  %v873_v19 = vld [vmem:[%s1284_s2 + $0x10] sm:$0xff]  ;;  %v205_v21 = vld [vmem:[%s1283_s3 + $0x20] sm:$0xff] }
   0xa   :  { %223 = vperm.xlu0 %896, %v201_v50   ;;  %233 = vperm.xlu1 %897, %v203_v14   ;;  %v207_v20 = vld [vmem:[%s1283_s3 + $0x30] sm:$0xff] }
   0xb   :  { %243 = vperm.xlu2 %898, %v205_v21  }
   0xc   :  { %117 = vmatpush.bf16.msra.mxu0 %v702_v16  ;;  %889 = vmatpush.bf16.msra.mxu2 %v702_v16 }
   0xd   :  { %146 = vmatpush.bf16.msra.mxu1 %v706_v17  ;;  %893 = vmatpush.bf16.msra.mxu3 %v706_v17  ;;  %v204_v17 = vld [vmem:[%s1283_s3 + $0x18] sm:$0xff] }
  0x10   :  { %118 = vmatpush.bf16.msra.mxu0 %v694_v22  ;;  %890 = vmatpush.bf16.msra.mxu2 %v694_v22  ;;  %v208_v22 = vld [vmem:[%s1283_s3 + $0x38] sm:$0xff] }
  0x11   :  { %147 = vmatpush.bf16.msra.mxu1 %v698_v23  ;;  %894 = vmatpush.bf16.msra.mxu3 %v698_v23  ;;  %v874_v23 = vld [vmem:[%s1284_s2 + $0x18] sm:$0xff] }
  0x12   :  { %228 = vperm.xlu0 %896, %v202_v62   ;;  %238 = vperm.xlu1 %897, %v204_v17  }
  0x13   :  { %723 = vmatmul.msk.bf16.vlgmr.msra.gmra.mxu0 %vm98_vm0, %v859_v24  ;;  %725 = vmatmul.msk.bf16.vlgmr.msra.gmra.mxu2 %vm98_vm0, %v861_v25 }
  0x14   :  { %727 = vmatmul.msk.bf16.vlgmr.msra.gmra.mxu1 %vm98_vm0, %v859_v24  ;;  %729 = vmatmul.msk.bf16.vlgmr.msra.gmra.mxu3 %vm98_vm0, %v861_v25  ;;  %v206_v24 = vld [vmem:[%s1283_s3 + $0x28] sm:$0xff] }
  0x15   :  { %v210_v25 = vld [vmem:[%s1283_s3 + $0x48] sm:$0xff]  ;;  %248 = vperm.xlu2 %898, %v206_v24  }
  0x1a   :  { %253 = vperm.xlu0 %896, %v207_v20   ;;  %258 = vperm.xlu1 %897, %v208_v22  }
  0x22   :  { %268 = vperm.xlu0 %896, %v210_v25  }
  0x23   :  { %724 = vmatmul.msk.bf16.gmra.mxu0 %vm98_vm0, %v860_v26  ;;  %726 = vmatmul.msk.bf16.gmra.mxu2 %vm98_vm0, %v862_v27 }
  0x24   :  { %728 = vmatmul.msk.bf16.gmra.mxu1 %vm98_vm0, %v860_v26  ;;  %730 = vmatmul.msk.bf16.gmra.mxu3 %vm98_vm0, %v862_v27  ;;  %v213_v26 = vld [vmem:[%s1283_s3 + $0x60] sm:$0xff] }
  0x25   :  { %v875_v27 = vld [vmem:[%s1284_s2 + $0x20] sm:$0xff] }
  0x2a   :  { %283 = vperm.xlu0 %896, %v213_v26  }
  0x90   :  { %v120_v28 = vpop.f32.mrf.mxu0 }
  0x91   :  { %v149_v29 = vpop.f32.mrf.mxu1 }
  0x92   :  { %v169_v30 = vpack.c.bf16 %v149_v29, %v120_v28  ;;  %v211_v28 = vld [vmem:[%s1283_s3 + $0x50] sm:$0xff]  ;;  %v216_v29 = vld [vmem:[%s1283_s3 + $0x78] sm:$0xff] }
  0x93   :  { %273 = vperm.xlu1 %897, %v211_v28   ;;  %298 = vperm.xlu0 %896, %v216_v29  }
  0x94   :  { %177 = vst [vmem:[#allocation2] sm:$0xff] %v169_v30  ;;  %v209_v30 = vld [vmem:[%s1283_s3 + $0x40] sm:$0xff] }
  0x95   :  { %263 = vperm.xlu2 %898, %v209_v30  }
  0x96   :  { %v130_v31 = vpop.f32.mrf.mxu2 }
  0x97   :  { %v159_v32 = vpop.f32.mrf.mxu3 }
  0x98   :  { %v173_v33 = vpack.c.bf16 %v159_v32, %v130_v31  ;;  %v122_v34 = vpop.f32.mrf.mxu0  ;;  %v214_v31 = vld [vmem:[%s1283_s3 + $0x68] sm:$0xff] }
  0x99   :  { %v151_v35 = vpop.f32.mrf.mxu1  ;;  %v876_v32 = vld [vmem:[%s1284_s2 + $0x28] sm:$0xff] }
  0x9a   :  { %181 = vst [vmem:[#allocation2 + $0x20] sm:$0xff] %v173_v33  ;;  %v170_v36 = vpack.c.bf16 %v151_v35, %v122_v34  ;;  %v212_v33 = vld [vmem:[%s1283_s3 + $0x58] sm:$0xff]  ;;  %v877_v34 = vld [vmem:[%s1284_s2 + $0x30] sm:$0xff] }
  0x9b   :  { %v765_v63 = vld [vmem:[#allocation2] sm:$0xf]  ;;  %v879_v0 = vld [vmem:[#allocation2 + $0x4] sm:$0xf]  ;;  %288 = vperm.xlu1 %897, %v214_v31   ;;  %v215_v35 = vld [vmem:[%s1283_s3 + $0x70] sm:$0xff] }
  0x9c   :  { %178 = vst [vmem:[#allocation2 + $0x8] sm:$0xff] %v170_v36  ;;  %v878_v36 = vld [vmem:[%s1284_s2 + $0x38] sm:$0xff] }
  0x9d   :  { %278 = vperm.xlu2 %898, %v212_v33  }
  0x9e   :  { %v132_v37 = vpop.f32.mrf.mxu2 }
  0x9f   :  { %v161_v38 = vpop.f32.mrf.mxu3 }
  0xa0   :  { %v174_v39 = vpack.c.bf16 %v161_v38, %v132_v37  ;;  %v125_v40 = vpop.f32.mrf.mxu0  ;;  %v224_v37 = vpop.permute.xlu0 %223 }
  0xa1   :  { %v154_v41 = vpop.f32.mrf.mxu1  ;;  %v797_v12 = vld [vmem:[#allocation2 + $0x20] sm:$0xf]  ;;  %v883_v13 = vld [vmem:[#allocation2 + $0x24] sm:$0xf] }
  0xa2   :  { %182 = vst [vmem:[#allocation2 + $0x28] sm:$0xff] %v174_v39  ;;  %v171_v42 = vpack.c.bf16 %v154_v41, %v125_v40 }
  0xa3   :  { %v880_v60 = vld [vmem:[#allocation2 + $0x4] sm:$0xf0]  ;;  %v767_v61 = vld [vmem:[#allocation2 + $0x8] sm:$0xf0] }
  0xa4   :  { %179 = vst [vmem:[#allocation2 + $0x10] sm:$0xff] %v171_v42  ;;  %v766_v1 = vor.u32 %v880_v60, %v765_v63  ;;  %v770_v2 = vor.u32 %v879_v0, %v767_v61 }
  0xa5   :  { %293 = vperm.xlu2 %898, %v215_v35  }
  0xa6   :  { %v135_v43 = vpop.f32.mrf.mxu2 }
  0xa7   :  { %v164_v44 = vpop.f32.mrf.mxu3 }
  0xa8   :  { %v175_v45 = vpack.c.bf16 %v164_v44, %v135_v43  ;;  %v127_v46 = vpop.f32.mrf.mxu0 }
  0xa9   :  { %v156_v47 = vpop.f32.mrf.mxu1  ;;  %v884_v10 = vld [vmem:[#allocation2 + $0x24] sm:$0xf0]  ;;  %v799_v11 = vld [vmem:[#allocation2 + $0x28] sm:$0xf0] }
  0xaa   :  { %183 = vst [vmem:[#allocation2 + $0x30] sm:$0xff] %v175_v45  ;;  %v172_v48 = vpack.c.bf16 %v156_v47, %v127_v46  ;;  %v798_v15 = vor.u32 %v884_v10, %v797_v12  ;;  %v802_v16 = vor.u32 %v883_v13, %v799_v11  ;;  %v229_v46 = vpop.permute.xlu0 %228 }
  0xab   :  { %v773_v54 = vld [vmem:[#allocation2 + $0x10] sm:$0xf]  ;;  %v881_v56 = vld [vmem:[#allocation2 + $0x14] sm:$0xf] }
  0xac   :  { %180 = vst [vmem:[#allocation2 + $0x18] sm:$0xff] %v172_v48 }
  0xae   :  { %v137_v51 = vpop.f32.mrf.mxu2 }
  0xaf   :  { %v166_v52 = vpop.f32.mrf.mxu3 }
  0xb0   :  { %v176_v53 = vpack.c.bf16 %v166_v52, %v137_v51 }
  0xb1   :  { %v805_v3 = vld [vmem:[#allocation2 + $0x30] sm:$0xf]  ;;  %v885_v6 = vld [vmem:[#allocation2 + $0x34] sm:$0xf] }
  0xb2   :  { %184 = vst [vmem:[#allocation2 + $0x38] sm:$0xff] %v176_v53 }
  0xb3   :  { %v882_v55 = vld [vmem:[#allocation2 + $0x14] sm:$0xf0]  ;;  %v775_v57 = vld [vmem:[#allocation2 + $0x18] sm:$0xf0] }
  0xb4   :  { %v774_v58 = vor.u32 %v882_v55, %v773_v54  ;;  %v778_v59 = vor.u32 %v881_v56, %v775_v57  ;;  %v234_v55 = vpop.permute.xlu1 %233 }
  0xb6   :  { %392 = vmatpush.bf16.msrb.mxu2 %v774_v58  ;;  %441 = vmatpush.bf16.msrb.mxu3 %v778_v59 }
  0xb9   :  { %v886_v5 = vld [vmem:[#allocation2 + $0x34] sm:$0xf0]  ;;  %v807_v7 = vld [vmem:[#allocation2 + $0x38] sm:$0xf0] }
  0xba   :  { %393 = vmatpush.bf16.msrb.mxu2 %v766_v1  ;;  %442 = vmatpush.bf16.msrb.mxu3 %v770_v2  ;;  %v806_v8 = vor.u32 %v886_v5, %v805_v3  ;;  %v810_v9 = vor.u32 %v885_v6, %v807_v7 }
  0xbc   :  { %546 = vmatpush.bf16.msrb.mxu0 %v806_v8  ;;  %595 = vmatpush.bf16.msrb.mxu1 %v810_v9  ;;  %v239_v0 = vpop.permute.xlu1 %238  ;;  %v244_v9 = vpop.permute.xlu2 %243 }
  0xbd   :  { %779 = vmatmul.msk.bf16.vlgmr.msrb.gmra.mxu2 %vm361_vm1, %v871_v4  ;;  %787 = vmatmul.msk.bf16.vlgmr.msrb.gmra.mxu3 %vm361_vm1, %v871_v4 }
  0xc0   :  { %547 = vmatpush.bf16.msrb.mxu0 %v798_v15  ;;  %596 = vmatpush.bf16.msrb.mxu1 %v802_v16 }
  0xc3   :  { %811 = vmatmul.msk.bf16.vlgmr.msrb.gmra.mxu0 %vm361_vm1, %v871_v4  ;;  %819 = vmatmul.msk.bf16.vlgmr.msrb.gmra.mxu1 %vm361_vm1, %v871_v4 }
  0xcd   :  { %780 = vmatmul.msk.bf16.gmra.mxu2 %vm361_vm1, %v872_v18  ;;  %788 = vmatmul.msk.bf16.gmra.mxu3 %vm361_vm1, %v872_v18 }
  0xd3   :  { %812 = vmatmul.msk.bf16.gmra.mxu0 %vm361_vm1, %v872_v18  ;;  %820 = vmatmul.msk.bf16.gmra.mxu1 %vm361_vm1, %v872_v18  ;;  %v249_v18 = vpop.permute.xlu2 %248 }
  0xdd   :  { %781 = vmatmul.msk.bf16.gmra.mxu2 %vm361_vm1, %v873_v19  ;;  %789 = vmatmul.msk.bf16.gmra.mxu3 %vm361_vm1, %v873_v19 }
  0xe3   :  { %813 = vmatmul.msk.bf16.gmra.mxu0 %vm361_vm1, %v873_v19  ;;  %821 = vmatmul.msk.bf16.gmra.mxu1 %vm361_vm1, %v873_v19 }
  0xed   :  { %782 = vmatmul.msk.bf16.gmra.mxu2 %vm361_vm1, %v874_v23  ;;  %790 = vmatmul.msk.bf16.gmra.mxu3 %vm361_vm1, %v874_v23 }
  0xf3   :  { %814 = vmatmul.msk.bf16.gmra.mxu0 %vm361_vm1, %v874_v23  ;;  %822 = vmatmul.msk.bf16.gmra.mxu1 %vm361_vm1, %v874_v23 }
  0xfd   :  { %783 = vmatmul.msk.bf16.gmra.mxu2 %vm361_vm1, %v875_v27  ;;  %791 = vmatmul.msk.bf16.gmra.mxu3 %vm361_vm1, %v875_v27 }
 0x103   :  { %815 = vmatmul.msk.bf16.gmra.mxu0 %vm361_vm1, %v875_v27  ;;  %823 = vmatmul.msk.bf16.gmra.mxu1 %vm361_vm1, %v875_v27  ;;  %v254_v27 = vpop.permute.xlu0 %253 }
 0x10d   :  { %784 = vmatmul.msk.bf16.gmra.mxu2 %vm361_vm1, %v876_v32  ;;  %792 = vmatmul.msk.bf16.gmra.mxu3 %vm361_vm1, %v876_v32 }
 0x113   :  { %816 = vmatmul.msk.bf16.gmra.mxu0 %vm361_vm1, %v876_v32  ;;  %824 = vmatmul.msk.bf16.gmra.mxu1 %vm361_vm1, %v876_v32 }
 0x11d   :  { %785 = vmatmul.msk.bf16.gmra.mxu2 %vm361_vm1, %v877_v34  ;;  %793 = vmatmul.msk.bf16.gmra.mxu3 %vm361_vm1, %v877_v34 }
 0x123   :  { %817 = vmatmul.msk.bf16.gmra.mxu0 %vm361_vm1, %v877_v34  ;;  %825 = vmatmul.msk.bf16.gmra.mxu1 %vm361_vm1, %v877_v34 }
 0x12d   :  { %786 = vmatmul.msk.bf16.gmra.mxu2 %vm361_vm1, %v878_v36  ;;  %794 = vmatmul.msk.bf16.gmra.mxu3 %vm361_vm1, %v878_v36 }
 0x133   :  { %818 = vmatmul.msk.bf16.gmra.mxu0 %vm361_vm1, %v878_v36  ;;  %826 = vmatmul.msk.bf16.gmra.mxu1 %vm361_vm1, %v878_v36  ;;  %v259_v36 = vpop.permute.xlu1 %258 }
 0x140   :  { %v395_v38 = vpop.f32.mrf.mxu2  ;;  %v444_v39 = vpop.f32.mrf.mxu3 }
 0x141   :  { %v549_v40 = vpop.f32.mrf.mxu0  ;;  %v598_v41 = vpop.f32.mrf.mxu1  ;;  %v396_v42 = vadd.f32 %v395_v38, %v224_v37  ;;  %v445_v43 = vadd.f32 %v444_v39, %v224_v37 }
 0x142   :  { %v550_v44 = vadd.f32 %v549_v40, %v224_v37  ;;  %v599_v45 = vadd.f32 %v598_v41, %v224_v37 }
 0x143   :  { %484 = vst [vmem:[%s1285_s4] sm:$0xff] %v396_v42 }
 0x144   :  { %485 = vst [vmem:[%s1285_s4 + $0x8] sm:$0xff] %v445_v43 }
 0x145   :  { %827 = vst [vmem:[%s1285_s4 + $0x100] sm:$0xff] %v550_v44 }
 0x146   :  { %828 = vst [vmem:[%s1285_s4 + $0x108] sm:$0xff] %v599_v45  ;;  %v264_v45 = vpop.permute.xlu2 %263 }
 0x148   :  { %v397_v47 = vpop.f32.mrf.mxu2  ;;  %v446_v48 = vpop.f32.mrf.mxu3 }
 0x149   :  { %v551_v49 = vpop.f32.mrf.mxu0  ;;  %v600_v50 = vpop.f32.mrf.mxu1  ;;  %v398_v51 = vadd.f32 %v397_v47, %v229_v46  ;;  %v447_v52 = vadd.f32 %v446_v48, %v229_v46 }
 0x14a   :  { %v552_v53 = vadd.f32 %v551_v49, %v229_v46  ;;  %v601_v54 = vadd.f32 %v600_v50, %v229_v46 }
 0x14b   :  { %486 = vst [vmem:[%s1285_s4 + $0x10] sm:$0xff] %v398_v51 }
 0x14c   :  { %487 = vst [vmem:[%s1285_s4 + $0x18] sm:$0xff] %v447_v52 }
 0x14d   :  { %829 = vst [vmem:[%s1285_s4 + $0x110] sm:$0xff] %v552_v53 }
 0x14e   :  { %830 = vst [vmem:[%s1285_s4 + $0x118] sm:$0xff] %v601_v54  ;;  %v269_v54 = vpop.permute.xlu0 %268 }
 0x150   :  { %v400_v56 = vpop.f32.mrf.mxu2  ;;  %v449_v57 = vpop.f32.mrf.mxu3 }
 0x151   :  { %v554_v58 = vpop.f32.mrf.mxu0  ;;  %v603_v59 = vpop.f32.mrf.mxu1  ;;  %v401_v60 = vadd.f32 %v400_v56, %v234_v55  ;;  %v450_v61 = vadd.f32 %v449_v57, %v234_v55 }
 0x152   :  { %v555_v62 = vadd.f32 %v554_v58, %v234_v55  ;;  %v604_v63 = vadd.f32 %v603_v59, %v234_v55 }
 0x153   :  { %488 = vst [vmem:[%s1285_s4 + $0x20] sm:$0xff] %v401_v60 }
 0x154   :  { %489 = vst [vmem:[%s1285_s4 + $0x28] sm:$0xff] %v450_v61 }
 0x155   :  { %831 = vst [vmem:[%s1285_s4 + $0x120] sm:$0xff] %v555_v62 }
 0x156   :  { %832 = vst [vmem:[%s1285_s4 + $0x128] sm:$0xff] %v604_v63  ;;  %v274_v63 = vpop.permute.xlu1 %273 }
 0x158   :  { %v402_v1 = vpop.f32.mrf.mxu2  ;;  %v451_v2 = vpop.f32.mrf.mxu3 }
 0x159   :  { %v556_v3 = vpop.f32.mrf.mxu0  ;;  %v605_v4 = vpop.f32.mrf.mxu1  ;;  %v403_v5 = vadd.f32 %v402_v1, %v239_v0  ;;  %v452_v6 = vadd.f32 %v451_v2, %v239_v0 }
 0x15a   :  { %v557_v7 = vadd.f32 %v556_v3, %v239_v0  ;;  %v606_v8 = vadd.f32 %v605_v4, %v239_v0 }
 0x15b   :  { %490 = vst [vmem:[%s1285_s4 + $0x30] sm:$0xff] %v403_v5 }
 0x15c   :  { %491 = vst [vmem:[%s1285_s4 + $0x38] sm:$0xff] %v452_v6 }
 0x15d   :  { %833 = vst [vmem:[%s1285_s4 + $0x130] sm:$0xff] %v557_v7 }
 0x15e   :  { %834 = vst [vmem:[%s1285_s4 + $0x138] sm:$0xff] %v606_v8  ;;  %v279_v8 = vpop.permute.xlu2 %278 }
 0x160   :  { %v405_v10 = vpop.f32.mrf.mxu2  ;;  %v454_v11 = vpop.f32.mrf.mxu3 }
 0x161   :  { %v559_v12 = vpop.f32.mrf.mxu0  ;;  %v608_v13 = vpop.f32.mrf.mxu1  ;;  %v406_v14 = vadd.f32 %v405_v10, %v244_v9  ;;  %v455_v15 = vadd.f32 %v454_v11, %v244_v9 }
 0x162   :  { %v560_v16 = vadd.f32 %v559_v12, %v244_v9  ;;  %v609_v17 = vadd.f32 %v608_v13, %v244_v9 }
 0x163   :  { %492 = vst [vmem:[%s1285_s4 + $0x40] sm:$0xff] %v406_v14 }
 0x164   :  { %493 = vst [vmem:[%s1285_s4 + $0x48] sm:$0xff] %v455_v15 }
 0x165   :  { %835 = vst [vmem:[%s1285_s4 + $0x140] sm:$0xff] %v560_v16 }
 0x166   :  { %836 = vst [vmem:[%s1285_s4 + $0x148] sm:$0xff] %v609_v17  ;;  %v284_v17 = vpop.permute.xlu0 %283 }
 0x168   :  { %v407_v19 = vpop.f32.mrf.mxu2  ;;  %v456_v20 = vpop.f32.mrf.mxu3 }
 0x169   :  { %v561_v21 = vpop.f32.mrf.mxu0  ;;  %v610_v22 = vpop.f32.mrf.mxu1  ;;  %v408_v23 = vadd.f32 %v407_v19, %v249_v18  ;;  %v457_v24 = vadd.f32 %v456_v20, %v249_v18 }
 0x16a   :  { %v562_v25 = vadd.f32 %v561_v21, %v249_v18  ;;  %v611_v26 = vadd.f32 %v610_v22, %v249_v18 }
 0x16b   :  { %494 = vst [vmem:[%s1285_s4 + $0x50] sm:$0xff] %v408_v23 }
 0x16c   :  { %495 = vst [vmem:[%s1285_s4 + $0x58] sm:$0xff] %v457_v24 }
 0x16d   :  { %837 = vst [vmem:[%s1285_s4 + $0x150] sm:$0xff] %v562_v25 }
 0x16e   :  { %838 = vst [vmem:[%s1285_s4 + $0x158] sm:$0xff] %v611_v26  ;;  %v289_v26 = vpop.permute.xlu1 %288 }
 0x170   :  { %v410_v28 = vpop.f32.mrf.mxu2  ;;  %v459_v29 = vpop.f32.mrf.mxu3 }
 0x171   :  { %v564_v30 = vpop.f32.mrf.mxu0  ;;  %v613_v31 = vpop.f32.mrf.mxu1  ;;  %v411_v32 = vadd.f32 %v410_v28, %v254_v27  ;;  %v460_v33 = vadd.f32 %v459_v29, %v254_v27 }
 0x172   :  { %v565_v34 = vadd.f32 %v564_v30, %v254_v27  ;;  %v614_v35 = vadd.f32 %v613_v31, %v254_v27 }
 0x173   :  { %496 = vst [vmem:[%s1285_s4 + $0x60] sm:$0xff] %v411_v32 }
 0x174   :  { %497 = vst [vmem:[%s1285_s4 + $0x68] sm:$0xff] %v460_v33 }
 0x175   :  { %839 = vst [vmem:[%s1285_s4 + $0x160] sm:$0xff] %v565_v34 }
 0x176   :  { %840 = vst [vmem:[%s1285_s4 + $0x168] sm:$0xff] %v614_v35  ;;  %v294_v35 = vpop.permute.xlu2 %293 }
 0x178   :  { %v412_v37 = vpop.f32.mrf.mxu2  ;;  %v461_v38 = vpop.f32.mrf.mxu3 }
 0x179   :  { %v566_v39 = vpop.f32.mrf.mxu0  ;;  %v615_v40 = vpop.f32.mrf.mxu1  ;;  %v413_v41 = vadd.f32 %v412_v37, %v259_v36  ;;  %v462_v42 = vadd.f32 %v461_v38, %v259_v36 }
 0x17a   :  { %v567_v43 = vadd.f32 %v566_v39, %v259_v36  ;;  %v616_v44 = vadd.f32 %v615_v40, %v259_v36 }
 0x17b   :  { %498 = vst [vmem:[%s1285_s4 + $0x70] sm:$0xff] %v413_v41 }
 0x17c   :  { %499 = vst [vmem:[%s1285_s4 + $0x78] sm:$0xff] %v462_v42 }
 0x17d   :  { %841 = vst [vmem:[%s1285_s4 + $0x170] sm:$0xff] %v567_v43 }
 0x17e   :  { %842 = vst [vmem:[%s1285_s4 + $0x178] sm:$0xff] %v616_v44  ;;  %v299_v44 = vpop.permute.xlu0 %298 }
 0x180   :  { %v415_v46 = vpop.f32.mrf.mxu2  ;;  %v464_v47 = vpop.f32.mrf.mxu3 }
 0x181   :  { %v569_v48 = vpop.f32.mrf.mxu0  ;;  %v618_v49 = vpop.f32.mrf.mxu1  ;;  %v416_v50 = vadd.f32 %v415_v46, %v264_v45  ;;  %v465_v51 = vadd.f32 %v464_v47, %v264_v45 }
 0x182   :  { %v570_v52 = vadd.f32 %v569_v48, %v264_v45  ;;  %v619_v53 = vadd.f32 %v618_v49, %v264_v45 }
 0x183   :  { %500 = vst [vmem:[%s1285_s4 + $0x80] sm:$0xff] %v416_v50 }
 0x184   :  { %501 = vst [vmem:[%s1285_s4 + $0x88] sm:$0xff] %v465_v51 }
 0x185   :  { %843 = vst [vmem:[%s1285_s4 + $0x180] sm:$0xff] %v570_v52 }
 0x186   :  { %844 = vst [vmem:[%s1285_s4 + $0x188] sm:$0xff] %v619_v53 }
 0x188   :  { %v417_v55 = vpop.f32.mrf.mxu2  ;;  %v466_v56 = vpop.f32.mrf.mxu3 }
 0x189   :  { %v571_v57 = vpop.f32.mrf.mxu0  ;;  %v620_v58 = vpop.f32.mrf.mxu1  ;;  %v418_v59 = vadd.f32 %v417_v55, %v269_v54  ;;  %v467_v60 = vadd.f32 %v466_v56, %v269_v54 }
 0x18a   :  { %v572_v61 = vadd.f32 %v571_v57, %v269_v54  ;;  %v621_v62 = vadd.f32 %v620_v58, %v269_v54 }
 0x18b   :  { %502 = vst [vmem:[%s1285_s4 + $0x90] sm:$0xff] %v418_v59 }
 0x18c   :  { %503 = vst [vmem:[%s1285_s4 + $0x98] sm:$0xff] %v467_v60 }
 0x18d   :  { %845 = vst [vmem:[%s1285_s4 + $0x190] sm:$0xff] %v572_v61 }
 0x18e   :  { %846 = vst [vmem:[%s1285_s4 + $0x198] sm:$0xff] %v621_v62 }
 0x190   :  { %v420_v0 = vpop.f32.mrf.mxu2  ;;  %v469_v1 = vpop.f32.mrf.mxu3 }
 0x191   :  { %v574_v2 = vpop.f32.mrf.mxu0  ;;  %v623_v3 = vpop.f32.mrf.mxu1  ;;  %v421_v4 = vadd.f32 %v420_v0, %v274_v63  ;;  %v470_v5 = vadd.f32 %v469_v1, %v274_v63 }
 0x192   :  { %v575_v6 = vadd.f32 %v574_v2, %v274_v63  ;;  %v624_v7 = vadd.f32 %v623_v3, %v274_v63 }
 0x193   :  { %504 = vst [vmem:[%s1285_s4 + $0xa0] sm:$0xff] %v421_v4 }
 0x194   :  { %505 = vst [vmem:[%s1285_s4 + $0xa8] sm:$0xff] %v470_v5 }
 0x195   :  { %847 = vst [vmem:[%s1285_s4 + $0x1a0] sm:$0xff] %v575_v6 }
 0x196   :  { %848 = vst [vmem:[%s1285_s4 + $0x1a8] sm:$0xff] %v624_v7 }
 0x198   :  { %v422_v9 = vpop.f32.mrf.mxu2  ;;  %v471_v10 = vpop.f32.mrf.mxu3 }
 0x199   :  { %v576_v11 = vpop.f32.mrf.mxu0  ;;  %v625_v12 = vpop.f32.mrf.mxu1  ;;  %v423_v13 = vadd.f32 %v422_v9, %v279_v8  ;;  %v472_v14 = vadd.f32 %v471_v10, %v279_v8 }
 0x19a   :  { %v577_v15 = vadd.f32 %v576_v11, %v279_v8  ;;  %v626_v16 = vadd.f32 %v625_v12, %v279_v8 }
 0x19b   :  { %506 = vst [vmem:[%s1285_s4 + $0xb0] sm:$0xff] %v423_v13 }
 0x19c   :  { %507 = vst [vmem:[%s1285_s4 + $0xb8] sm:$0xff] %v472_v14 }
 0x19d   :  { %849 = vst [vmem:[%s1285_s4 + $0x1b0] sm:$0xff] %v577_v15 }
 0x19e   :  { %850 = vst [vmem:[%s1285_s4 + $0x1b8] sm:$0xff] %v626_v16 }
 0x1a0   :  { %v425_v18 = vpop.f32.mrf.mxu2  ;;  %v474_v19 = vpop.f32.mrf.mxu3 }
 0x1a1   :  { %v579_v20 = vpop.f32.mrf.mxu0  ;;  %v628_v21 = vpop.f32.mrf.mxu1  ;;  %v426_v22 = vadd.f32 %v425_v18, %v284_v17  ;;  %v475_v23 = vadd.f32 %v474_v19, %v284_v17 }
 0x1a2   :  { %v580_v24 = vadd.f32 %v579_v20, %v284_v17  ;;  %v629_v25 = vadd.f32 %v628_v21, %v284_v17 }
 0x1a3   :  { %508 = vst [vmem:[%s1285_s4 + $0xc0] sm:$0xff] %v426_v22 }
 0x1a4   :  { %509 = vst [vmem:[%s1285_s4 + $0xc8] sm:$0xff] %v475_v23 }
 0x1a5   :  { %851 = vst [vmem:[%s1285_s4 + $0x1c0] sm:$0xff] %v580_v24 }
 0x1a6   :  { %852 = vst [vmem:[%s1285_s4 + $0x1c8] sm:$0xff] %v629_v25 }
 0x1a8   :  { %v427_v27 = vpop.f32.mrf.mxu2  ;;  %v476_v28 = vpop.f32.mrf.mxu3 }
 0x1a9   :  { %v581_v29 = vpop.f32.mrf.mxu0  ;;  %v630_v30 = vpop.f32.mrf.mxu1  ;;  %v428_v31 = vadd.f32 %v427_v27, %v289_v26  ;;  %v477_v32 = vadd.f32 %v476_v28, %v289_v26 }
 0x1aa   :  { %v582_v33 = vadd.f32 %v581_v29, %v289_v26  ;;  %v631_v34 = vadd.f32 %v630_v30, %v289_v26 }
 0x1ab   :  { %510 = vst [vmem:[%s1285_s4 + $0xd0] sm:$0xff] %v428_v31 }
 0x1ac   :  { %511 = vst [vmem:[%s1285_s4 + $0xd8] sm:$0xff] %v477_v32 }
 0x1ad   :  { %853 = vst [vmem:[%s1285_s4 + $0x1d0] sm:$0xff] %v582_v33 }
 0x1ae   :  { %854 = vst [vmem:[%s1285_s4 + $0x1d8] sm:$0xff] %v631_v34 }
 0x1b0   :  { %v430_v36 = vpop.f32.mrf.mxu2  ;;  %v479_v37 = vpop.f32.mrf.mxu3 }
 0x1b1   :  { %v584_v38 = vpop.f32.mrf.mxu0  ;;  %v633_v39 = vpop.f32.mrf.mxu1  ;;  %v431_v40 = vadd.f32 %v430_v36, %v294_v35  ;;  %v480_v41 = vadd.f32 %v479_v37, %v294_v35 }
 0x1b2   :  { %v585_v42 = vadd.f32 %v584_v38, %v294_v35  ;;  %v634_v43 = vadd.f32 %v633_v39, %v294_v35 }
 0x1b3   :  { %512 = vst [vmem:[%s1285_s4 + $0xe0] sm:$0xff] %v431_v40 }
 0x1b4   :  { %513 = vst [vmem:[%s1285_s4 + $0xe8] sm:$0xff] %v480_v41 }
 0x1b5   :  { %855 = vst [vmem:[%s1285_s4 + $0x1e0] sm:$0xff] %v585_v42 }
 0x1b6   :  { %856 = vst [vmem:[%s1285_s4 + $0x1e8] sm:$0xff] %v634_v43 }
 0x1b8   :  { %v432_v45 = vpop.f32.mrf.mxu2  ;;  %v481_v46 = vpop.f32.mrf.mxu3 }
 0x1b9   :  { %v433_v47 = vadd.f32 %v432_v45, %v299_v44  ;;  %v482_v48 = vadd.f32 %v481_v46, %v299_v44  ;;  %v586_v49 = vpop.f32.mrf.mxu0  ;;  %v635_v50 = vpop.f32.mrf.mxu1 }
 0x1ba   :  { %v587_v51 = vadd.f32 %v586_v49, %v299_v44  ;;  %v636_v52 = vadd.f32 %v635_v50, %v299_v44 }
 0x1bb   :  { %514 = vst [vmem:[%s1285_s4 + $0xf0] sm:$0xff] %v433_v47 }
 0x1bc   :  { %515 = vst [vmem:[%s1285_s4 + $0xf8] sm:$0xff] %v482_v48 }
 0x1bd   :  { %857 = vst [vmem:[%s1285_s4 + $0x1f0] sm:$0xff] %v587_v51 }
 0x1be   :  { %858 = vst [vmem:[%s1285_s4 + $0x1f8] sm:$0xff] %v636_v52 }

</bundles_post_ra>
